<compile_context>
chip_gen: v7x
topology: tpu7x:2x2x1
jax: 0.10.0
libtpu: 0.0.40
codegen_flags: <defaults>
</compile_context>

<pallas_src>
import jax
import jax.numpy as jnp
from jax import lax
from jax.experimental import pallas as pl
from jax.experimental.pallas import tpu as pltpu

_BIG = 1e30                    # sentinel "distance" for padded codebook columns
_VMEM_BUDGET = 40 * 1024 * 1024  # per-tile working-set target (v7x-safe)


def _round_up(x, m):
    return ((x + m - 1) // m) * m


def _round_down(x, m):
    return (x // m) * m


def _vq_kernel(x_ref, et_ref, e_ref, e2h_ref, q_ref, idx_ref):
    """One row-tile of the VQ forward pass.

    x_ref   : (TM, D)  f32   input rows (pipelined)
    et_ref  : (D, Kp)  bf16/f32 codebook^T  (VMEM-resident, distance matmul)
    e_ref   : (Kp, D)  f32   codebook       (VMEM-resident, exact row select)
    e2h_ref : (1, Kp)  f32   0.5*||e||^2, _BIG on padded columns
    q_ref   : (TM, D)  f32   quantized rows
    idx_ref : (TM, 1)  i32   nearest-code indices
    """
    tm = x_ref.shape[0]
    kp = e_ref.shape[0]

    x = x_ref[...]                                            # (TM, D) f32

    # Distances up to the per-row constant ||x||^2 and a global 0.5 scale
    # (neither changes the argmin):  0.5*||e||^2 - x @ e^T   (bf16 MXU).
    xe = jnp.dot(x.astype(et_ref.dtype), et_ref[...],
                 preferred_element_type=jnp.float32)          # (TM, Kp)
    dists = e2h_ref[...] - xe                                 # (TM, Kp)

    # First-occurrence argmin (matches torch.argmin tie-break); min+select
    # instead of jnp.argmin for portable Mosaic lowering.
    dmin = jnp.min(dists, axis=1, keepdims=True)              # (TM, 1)
    col = lax.broadcasted_iota(jnp.int32, (tm, kp), 1)        # (TM, Kp)
    idx = jnp.min(jnp.where(dists <= dmin, col, kp),
                  axis=1, keepdims=True)                      # (TM, 1) int32

    # Exact row-select via f32 one-hot matmul (padded codebook rows are zero
    # and padded one-hot columns are never selected).
    enc = (col == idx).astype(jnp.float32)                    # (TM, Kp)
    q_ref[...] = jnp.dot(enc, e_ref[...],
                         preferred_element_type=jnp.float32)  # (TM, D)
    idx_ref[...] = idx
    # TODO(synk): for very large codebooks (Kp >= ~2048) an inner K-tiling
    # loop with a running (min, argmin) carry would keep the (TM, Kp)
    # intermediates out of VMEM; here tm is auto-shrunk instead.


def vq_ema_forward(x_nchw, embedding, commitment_cost, *, tm=1024,
                   dist_dtype=jnp.bfloat16):
    """Forward pass of VectorQuantizerEMA (inference values).

    Returns (loss, quantized_nchw, perplexity, encodings) exactly as the
    PyTorch module.  The straight-through estimator
    `inputs + (quantized - inputs).detach()` is value-wise equal to
    `quantized`, so forward values are unaffected.

    `dist_dtype` controls the precision of the distance matmul only
    (bf16 default per the MXU roofline; argmin ties may resolve differently
    than exact f32).  The quantized values are always exact codebook rows.
    """
    b, c, h, w = x_nchw.shape
    k, d = embedding.shape
    assert c == d, "channel dim must equal embedding_dim"

    x_nhwc = jnp.transpose(x_nchw, (0, 2, 3, 1))      # NCHW -> NHWC
    flat = x_nhwc.reshape(-1, d).astype(jnp.float32)  # (N, D)
    n = flat.shape[0]

    kp = _round_up(k, 128)                            # lane-dense codebook dim
    et_itemsize = jnp.dtype(dist_dtype).itemsize

    # --- row-tile size: multiple of 8, auto-shrunk to fit the VMEM budget ----
    tm = max(8, _round_down(int(tm), 8))
    tm = min(tm, _round_up(n, 8))

    def _tile_bytes(t):
        resident = 2 * (kp * d * 4 + d * kp * et_itemsize + kp * 4)
        streams = 2 * (2 * t * d * 4 + t * 4)         # x in, quant out, idx out
        live = 3 * t * kp * 4 + 2 * t * d * 4         # dists/col/enc + misc
        return resident + streams + live

    while tm > 8 and _tile_bytes(tm) > _VMEM_BUDGET:
        tm = max(8, _round_down(tm // 2, 8))

    g = pl.cdiv(n, tm)
    n_pad = g * tm

    # --- operand preparation --------------------------------------------------
    flat_p = jnp.pad(flat, ((0, n_pad - n), (0, 0)))
    e = embedding.astype(jnp.float32)
    e_p = jnp.pad(e, ((0, kp - k), (0, 0)))           # zero rows for padding
    et = e_p.T.astype(dist_dtype)                     # (D, Kp), bf16 by default
    e2h = 0.5 * jnp.sum(e * e, axis=1)                # fold the 2x into the norm
    e2h_p = jnp.pad(e2h, (0, kp - k),
                    constant_values=_BIG).reshape(1, kp)

    vmem_limit = int(min(max(_tile_bytes(tm) + (16 << 20), 32 << 20),
                         100 << 20))

    q_out, idx_out = pl.pallas_call(
        _vq_kernel,
        out_shape=(
            jax.ShapeDtypeStruct((n_pad, d), jnp.float32),   # quantized rows
            jax.ShapeDtypeStruct((n_pad, 1), jnp.int32),     # code indices
        ),
        grid=(g,),
        in_specs=[
            pl.BlockSpec((tm, d), lambda i: (i, 0)),   # x tile     (pipelined)
            pl.BlockSpec((d, kp), lambda i: (0, 0)),   # codebook^T (resident)
            pl.BlockSpec((kp, d), lambda i: (0, 0)),   # codebook   (resident)
            pl.BlockSpec((1, kp), lambda i: (0, 0)),   # 0.5*||e||^2 (resident)
        ],
        out_specs=(
            pl.BlockSpec((tm, d), lambda i: (i, 0)),
            pl.BlockSpec((tm, 1), lambda i: (i, 0)),
        ),
        compiler_params=pltpu.CompilerParams(
            dimension_semantics=("parallel",),
            vmem_limit_bytes=vmem_limit),
    )(flat_p, et, e_p, e2h_p)

    # --- cheap plain-JAX finalization (fused by XLA) ---------------------------
    idx = idx_out[:n, 0]                               # (N,) int32
    encodings = (idx[:, None] ==
                 jnp.arange(k, dtype=jnp.int32)[None, :]).astype(jnp.float32)

    quant_flat = q_out[:n, :]
    e_latent_loss = jnp.mean((quant_flat - flat) ** 2)
    loss = commitment_cost * e_latent_loss

    avg_probs = jnp.sum(encodings, axis=0) / n
    perplexity = jnp.exp(-jnp.sum(avg_probs * jnp.log(avg_probs + 1e-10)))

    quantized = quant_flat.reshape(b, h, w, d)
    # Straight-through estimator: forward value == quantized.
    quantized_nchw = jnp.transpose(quantized, (0, 3, 1, 2))   # NHWC -> NCHW

    # TODO(synk): the EMA buffer updates (_ema_cluster_size, _ema_w, embedding
    # refresh) from the training branch are stateful side effects that do not
    # influence this call's returned values; they are not updated here.

    return loss, quantized_nchw, perplexity, encodings


def _vq_reference(x_nchw, embedding, commitment_cost, dist_dtype=jnp.float32):
    """Pure-JAX reference mirroring the PyTorch forward (eval mode).

    With dist_dtype=bf16 the argmin uses the same rounding as the kernel's
    fast path (rounding-matched reference); f32 reproduces the PyTorch math.
    """
    b, c, h, w = x_nchw.shape
    k, d = embedding.shape
    x = jnp.transpose(x_nchw, (0, 2, 3, 1)).astype(jnp.float32)
    flat = x.reshape(-1, d)
    e = embedding.astype(jnp.float32)
    if jnp.dtype(dist_dtype) == jnp.dtype(jnp.float32):
        dists = (jnp.sum(flat ** 2, axis=1, keepdims=True)
                 + jnp.sum(e ** 2, axis=1)[None, :]
                 - 2.0 * flat @ e.T)
    else:
        xe = jnp.dot(flat.astype(dist_dtype), e.T.astype(dist_dtype),
                     preferred_element_type=jnp.float32)
        dists = 0.5 * jnp.sum(e * e, axis=1)[None, :] - xe
    idx = jnp.argmin(dists, axis=1)
    enc = jax.nn.one_hot(idx, k, dtype=jnp.float32)
    quant = enc @ e
    e_latent_loss = jnp.mean((quant - flat) ** 2)
    loss = commitment_cost * e_latent_loss
    avg = jnp.mean(enc, axis=0)
    perp = jnp.exp(-jnp.sum(avg * jnp.log(avg + 1e-10)))
    qz = jnp.transpose(quant.reshape(b, h, w, d), (0, 3, 1, 2))
    return loss, qz, perp, enc


if __name__ == "__main__":
    # Module hyperparameters (deterministic, in-script init).
    num_embeddings = 8
    embedding_dim = 4
    commitment_cost = 0.25
    decay = 0.99          # unused in the eval forward values
    epsilon = 1e-5        # unused in the eval forward values

    key = jax.random.PRNGKey(0)
    k_x, k_e = jax.random.split(key)

    # NCHW conv activation: batch=2, channels=embedding_dim=4, 16x16.
    x = jax.random.normal(k_x, (2, embedding_dim, 16, 16), dtype=jnp.float32)
    embedding_weight = jax.random.normal(
        k_e, (num_embeddings, embedding_dim), dtype=jnp.float32)

    # --- exact path (f32 distances) vs PyTorch-style reference ---------------
    # tm=128 -> 4 grid steps on the toy shape, exercising the tiling.
    loss, quantized, perplexity, encodings = vq_ema_forward(
        x, embedding_weight, commitment_cost, tm=128, dist_dtype=jnp.float32)
    jax.block_until_ready((loss, quantized, perplexity, encodings))

    assert quantized.shape == x.shape
    assert encodings.shape == (2 * 16 * 16, num_embeddings)
    assert loss.shape == () and perplexity.shape == ()

    r_loss, r_quant, r_perp, r_enc = _vq_reference(
        x, embedding_weight, commitment_cost, dist_dtype=jnp.float32)
    assert jnp.allclose(loss, r_loss, rtol=1e-5, atol=1e-6)
    assert jnp.allclose(perplexity, r_perp, rtol=1e-5, atol=1e-6)
    assert jnp.allclose(quantized, r_quant, rtol=1e-5, atol=1e-6)
    assert jnp.allclose(encodings, r_enc)

    # --- default fast path (bf16 distance matmul) vs matched reference -------
    b_loss, b_quant, b_perp, b_enc = vq_ema_forward(
        x, embedding_weight, commitment_cost, tm=128)
    jax.block_until_ready((b_loss, b_quant, b_perp, b_enc))

    m_loss, m_quant, m_perp, m_enc = _vq_reference(
        x, embedding_weight, commitment_cost, dist_dtype=jnp.bfloat16)
    assert jnp.allclose(b_loss, m_loss, rtol=1e-5, atol=1e-6)
    assert jnp.allclose(b_perp, m_perp, rtol=1e-5, atol=1e-6)
    assert jnp.allclose(b_quant, m_quant, rtol=1e-5, atol=1e-6)
    assert jnp.allclose(b_enc, m_enc)
    # bf16 argmin may resolve rare near-ties differently than exact f32, but
    # the scalar outputs remain very close to the exact-path values.
    assert jnp.allclose(b_loss, r_loss, rtol=0.1, atol=1e-3)
    assert jnp.allclose(b_perp, r_perp, rtol=0.1, atol=1e-3)

    print("KERNEL_OK")
</pallas_src>

<mosaic_0001>
module attributes {stable_mosaic.version = 11 : i64} {
  func.func @_vq_kernel(%arg0: i32, %arg1: memref<128x4xf32, #tpu.memory_space<vmem>>, %arg2: memref<4x128xf32, #tpu.memory_space<vmem>>, %arg3: memref<128x4xf32, #tpu.memory_space<vmem>>, %arg4: memref<1x128xf32, #tpu.memory_space<vmem>>, %arg5: memref<128x4xf32, #tpu.memory_space<vmem>>, %arg6: memref<128x1xi32, #tpu.memory_space<vmem>>) attributes {dimension_semantics = [#tpu.dimension_semantics<parallel>], iteration_bounds = array<i64: 4>, scalar_prefetch = 0 : i64, scratch_operands = 0 : i64, tpu.core_type = #tpu.core_type<tc>, window_params = [{transform_indices = @transform_0, window_bounds = array<i64: 128, 4>}, {pipeline_mode = #tpu.pipeline_mode<synchronous>, transform_indices = @transform_1, window_bounds = array<i64: 4, 128>}, {pipeline_mode = #tpu.pipeline_mode<synchronous>, transform_indices = @transform_2, window_bounds = array<i64: 128, 4>}, {pipeline_mode = #tpu.pipeline_mode<synchronous>, transform_indices = @transform_3, window_bounds = array<i64: 1, 128>}, {transform_indices = @transform_4, window_bounds = array<i64: 128, 4>}, {transform_indices = @transform_5, window_bounds = array<i64: 128, 1>}]} {
    %c0 = arith.constant 0 : index
    %c0_0 = arith.constant 0 : index
    %0 = vector.load %arg1[%c0, %c0_0] : memref<128x4xf32, #tpu.memory_space<vmem>>, vector<128x4xf32>
    %c0_1 = arith.constant 0 : index
    %c0_2 = arith.constant 0 : index
    %1 = vector.load %arg2[%c0_1, %c0_2] : memref<4x128xf32, #tpu.memory_space<vmem>>, vector<4x128xf32>
    %cst = arith.constant dense<0.000000e+00> : vector<128x128xf32>
    %2 = tpu.matmul %0, %1, %cst {dimension_numbers = #tpu.dot_dimension_numbers<[1], [0], [0], [1], [0, 0, 1, 1], [], []>} : vector<128x4xf32>, vector<4x128xf32>, vector<128x128xf32> -> vector<128x128xf32>
    %c0_3 = arith.constant 0 : index
    %c0_4 = arith.constant 0 : index
    %3 = vector.load %arg4[%c0_3, %c0_4] : memref<1x128xf32, #tpu.memory_space<vmem>>, vector<1x128xf32>
    %4 = vector.broadcast %3 : vector<1x128xf32> to vector<128x128xf32>
    %5 = arith.subf %4, %2 : vector<128x128xf32>
    %cst_5 = arith.constant dense<0x7F800000> : vector<128xf32>
    %6 = vector.multi_reduction <minimumf>, %5, %cst_5 [1] : vector<128x128xf32> to vector<128xf32>
    %7 = vector.shape_cast %6 : vector<128xf32> to vector<128x1xf32>
    %8 = tpu.iota {dimensions = array<i32: 1>} : vector<128x128xi32>
    %9 = vector.broadcast %7 : vector<128x1xf32> to vector<128x128xf32>
    %10 = arith.cmpf ole, %5, %9 : vector<128x128xf32>
    %c128_i32 = arith.constant 128 : i32
    %11 = vector.broadcast %c128_i32 : i32 to vector<128x128xi32>
    %12 = arith.select %10, %8, %11 : vector<128x128xi1>, vector<128x128xi32>
    %cst_6 = arith.constant dense<2147483647> : vector<128xi32>
    %13 = vector.multi_reduction <minsi>, %12, %cst_6 [1] : vector<128x128xi32> to vector<128xi32>
    %14 = vector.shape_cast %13 : vector<128xi32> to vector<128x1xi32>
    %15 = vector.broadcast %14 : vector<128x1xi32> to vector<128x128xi32>
    %16 = arith.cmpi eq, %8, %15 : vector<128x128xi32>
    %17 = arith.extui %16 : vector<128x128xi1> to vector<128x128xi32>
    %18 = arith.sitofp %17 : vector<128x128xi32> to vector<128x128xf32>
    %c0_7 = arith.constant 0 : index
    %c0_8 = arith.constant 0 : index
    %19 = vector.load %arg3[%c0_7, %c0_8] : memref<128x4xf32, #tpu.memory_space<vmem>>, vector<128x4xf32>
    %cst_9 = arith.constant dense<0.000000e+00> : vector<128x4xf32>
    %20 = tpu.matmul %18, %19, %cst_9 {dimension_numbers = #tpu.dot_dimension_numbers<[1], [0], [0], [1], [0, 0, 1, 1], [], []>} : vector<128x128xf32>, vector<128x4xf32>, vector<128x4xf32> -> vector<128x4xf32>
    %c0_10 = arith.constant 0 : index
    %c0_11 = arith.constant 0 : index
    %21 = vector.load %arg5[%c0_10, %c0_11] : memref<128x4xf32, #tpu.memory_space<vmem>>, vector<128x4xf32>
    tpu.vector_store %arg5[%c0_10, %c0_11], %20 {strides = array<i32>} : memref<128x4xf32, #tpu.memory_space<vmem>>, vector<128x4xf32>,
    %c0_12 = arith.constant 0 : index
    %c0_13 = arith.constant 0 : index
    %22 = vector.load %arg6[%c0_12, %c0_13] : memref<128x1xi32, #tpu.memory_space<vmem>>, vector<128x1xi32>
    tpu.vector_store %arg6[%c0_12, %c0_13], %14 {strides = array<i32>} : memref<128x1xi32, #tpu.memory_space<vmem>>, vector<128x1xi32>,
    return
  }
  func.func @transform_0(%arg0: i32) -> (i32, i32) {
    %c0_i32 = arith.constant 0 : i32
    %c0_i32_0 = arith.constant 0 : i32
    return %arg0, %c0_i32 : i32, i32
  }
  func.func @transform_1(%arg0: i32) -> (i32, i32) {
    %c0_i32 = arith.constant 0 : i32
    %c0_i32_0 = arith.constant 0 : i32
    %c0_i32_1 = arith.constant 0 : i32
    return %c0_i32, %c0_i32_0 : i32, i32
  }
  func.func @transform_2(%arg0: i32) -> (i32, i32) {
    %c0_i32 = arith.constant 0 : i32
    %c0_i32_0 = arith.constant 0 : i32
    %c0_i32_1 = arith.constant 0 : i32
    return %c0_i32, %c0_i32_0 : i32, i32
  }
  func.func @transform_3(%arg0: i32) -> (i32, i32) {
    %c0_i32 = arith.constant 0 : i32
    %c0_i32_0 = arith.constant 0 : i32
    %c0_i32_1 = arith.constant 0 : i32
    return %c0_i32, %c0_i32_0 : i32, i32
  }
  func.func @transform_4(%arg0: i32) -> (i32, i32) {
    %c0_i32 = arith.constant 0 : i32
    %c0_i32_0 = arith.constant 0 : i32
    return %arg0, %c0_i32 : i32, i32
  }
  func.func @transform_5(%arg0: i32) -> (i32, i32) {
    %c0_i32 = arith.constant 0 : i32
    %c0_i32_0 = arith.constant 0 : i32
    return %arg0, %c0_i32 : i32, i32
  }
}

</mosaic_0001>

<bundles_post_ra>
// kernel: tpu_custom_call.1
= control target key start
LH: loop header
LB: loop body
LE: loop exit
PB: predicated region body
PF: predicated region fallthrough
CT: control target
= control target key end

     0   :  { %s1392_s18 = smov 0   ;;  %s1867_s0 = inlined_call_operand.vmem [shape: f32[512,4], index: 0, kind: input, shape index: {}]   ;;  %s1868_s1 = inlined_call_operand.vmem [shape: f32[4,128], index: 1, kind: input, shape index: {}]   ;;  %s1869_s2 = inlined_call_operand.vmem [shape: f32[128,4], index: 2, kind: input, shape index: {}]   ;;  %s1870_s3 = inlined_call_operand.vmem [shape: f32[1,128], index: 3, kind: input, shape index: {}]   ;;  %s1871_s4 = inlined_call_operand.vmem [shape: f32[512,4], index: 4, kind: output, shape index: {0}]   ;;  %s1872_s5 = inlined_call_operand.vmem [shape: s32[512,1], index: 5, kind: output, shape index: {1}]  }
   0x1 LB: > { %s1102_s19 = sadd.s32 4294967295, %s1359_s18   ;;  %p1106_p0 = scmp.ge.s32.totalorder %s1359_s18, 1  ;;  %s1359_s18 = sphi %s1392_s18, %s16_s18  }
   0x2   : > { %p191_p1 = scmp.lt.s32.totalorder %s1359_s18, 5 }
   0x4   : > { %p192_p2 = pnand %p1106_p0, %p191_p1 }
   0x5   : > { %v258_v0 = vld [vmem:[%s1868_s1] sm:$0xf] (!%p192_p2)  ;;  %vm308_vm0 = vcmask (!%p192_p2), 1043456   ;;  %s1107_s22 = sshll.u32 (!%p192_p2), %s1102_s19, 4  ;;  %vm259_vm1 = vcmask (!%p192_p2), 31744   ;;  %v512_v50 = vlaneseq (!%p192_p2) }
   0x6   : > { %195 = sbr.rel (%p192_p2) target bundleno = 933 (0x3a5), region = 36  ;;  %1214 = vmatprep.subr.msk.mxu0 (!%p192_p2), %vm308_vm0, %v258_v0  ;;  %p225_p3 = scmp.lt.s32.totalorder (!%p192_p2), %s1107_s22, 63  ;;  %v1130_v17 = vld [vmem:[%s1870_s3] ss:$0 sm:$0xff] (!%p192_p2) }
   0x7   : > { %1215 = vmatpush3.msk.msra.mxu0 (!%p192_p2), %vm308_vm0, %v258_v0  ;;  %v1479_v52 = vand.u32 (!%p192_p2), 127, %v512_v50 }
   0xd   : > { %s1874_s22 = smov (!%p225_p3, %s1107_s22), 63 }
   0xe   : > { %s1403_s23 = sshll.u32 %s1874_s22, 3 }
   0xf   : > { %s1409_s26 = scalar_lea.vmem %s1867_s0, %s1403_s23  ;;  %s1738_s15 = scalar_lea.vmem %s1872_s5, %s1403_s23 }
  0x10   : > { %v242_v1 = vld [vmem:[%s1409_s26] sm:$0xff]  ;;  %v243_v2 = vld [vmem:[%s1409_s26 + $0x8] sm:$0xff]  ;;  %v244_v3 = vld [vmem:[%s1409_s26 + $0x10] sm:$0xff]  ;;  %s1830_s19 = scalar_lea.vmem %s1871_s4, %s1403_s23 }
  0x11   : > { %1216 = vmatprep.mubr.msk.f32.mxu0 %vm259_vm1, %v242_v1  ;;  %v245_v4 = vld [vmem:[%s1409_s26 + $0x18] sm:$0xff]  ;;  %v246_v5 = vld [vmem:[%s1409_s26 + $0x20] sm:$0xff]  ;;  %v247_v6 = vld [vmem:[%s1409_s26 + $0x28] sm:$0xff] }
  0x12   : > { %1217 = vmatmul.mubr.msk.f32.vlgmr.msra.gmra.mrb[0].mxu0 %vm259_vm1, %v243_v2  ;;  %v248_v7 = vld [vmem:[%s1409_s26 + $0x30] sm:$0xff]  ;;  %v249_v8 = vld [vmem:[%s1409_s26 + $0x38] sm:$0xff]  ;;  %v250_v9 = vld [vmem:[%s1409_s26 + $0x40] sm:$0xff] }
  0x13   : > { %1219 = vmatprep.mubr.msk.f32.mxu0 %vm259_vm1, %v244_v3  ;;  %v251_v10 = vld [vmem:[%s1409_s26 + $0x48] sm:$0xff]  ;;  %v252_v11 = vld [vmem:[%s1409_s26 + $0x50] sm:$0xff]  ;;  %v253_v12 = vld [vmem:[%s1409_s26 + $0x58] sm:$0xff] }
  0x14   : > { %v254_v13 = vld [vmem:[%s1409_s26 + $0x60] sm:$0xff]  ;;  %v255_v14 = vld [vmem:[%s1409_s26 + $0x68] sm:$0xff]  ;;  %v256_v15 = vld [vmem:[%s1409_s26 + $0x70] sm:$0xff] }
  0x15   : > { %v257_v16 = vld [vmem:[%s1409_s26 + $0x78] sm:$0xff] }
  0x16   : > { %1220 = vmatmul.mubr.msk.f32.gmra.mrb[2].mxu0 %vm259_vm1, %v245_v4 }
  0x17   : > { %1222 = vmatprep.mubr.msk.f32.mxu0 %vm259_vm1, %v246_v5 }
  0x1a   : > { %1223 = vmatmul.mubr.msk.f32.gmra.mrb[4].mxu0 %vm259_vm1, %v247_v6 }
  0x1b   : > { %1225 = vmatprep.mubr.msk.f32.mxu0 %vm259_vm1, %v248_v7 }
  0x1e   : > { %1226 = vmatmul.mubr.msk.f32.gmra.mrb[6].mxu0 %vm259_vm1, %v249_v8 }
  0x1f   : > { %1228 = vmatprep.mubr.msk.f32.mxu0 %vm259_vm1, %v250_v9 }
  0x22   : > { %1229 = vmatmul.mubr.msk.f32.gmra.mrb[8].mxu0 %vm259_vm1, %v251_v10 }
  0x23   : > { %1231 = vmatprep.mubr.msk.f32.mxu0 %vm259_vm1, %v252_v11 }
  0x26   : > { %1232 = vmatmul.mubr.msk.f32.gmra.mrb[10].mxu0 %vm259_vm1, %v253_v12 }
  0x27   : > { %1234 = vmatprep.mubr.msk.f32.mxu0 %vm259_vm1, %v254_v13 }
  0x2a   : > { %1235 = vmatmul.mubr.msk.f32.gmra.mrb[12].mxu0 %vm259_vm1, %v255_v14 }
  0x2b   : > { %1237 = vmatprep.mubr.msk.f32.mxu0 %vm259_vm1, %v256_v15 }
  0x2e   : > { %1238 = vmatmul.mubr.msk.f32.gmra.mrb[14].mxu0 %vm259_vm1, %v257_v16 }
  0xe5   : > { %v1218_v18 = vpop.f32.mrb[0].mxu0 }
  0xe6   : > { %v378_v19 = vpop.f32.mrb[1].mxu0  ;;  %v465_v34 = vsub.f32 %v1130_v17, %v1218_v18 }
  0xe7   : > { %v1446_v20 = vsub.f32 %v1130_v17, %v378_v19 }
  0xe9   : > { %480 = vmin.xlane.f32.xlu0 %v1446_v20  ;;  %v1221_v21 = vpop.f32.mrb[2].mxu0 }
  0xea   : > { %v388_v22 = vpop.f32.mrb[3].mxu0  ;;  %v1458_v42 = vsub.f32 %v1130_v17, %v1221_v21 }
  0xeb   : > { %v1455_v38 = vsub.f32 %v1130_v17, %v388_v22 }
  0xed   : > { %v1224_v23 = vpop.f32.mrb[4].mxu0 }
  0xee   : > { %v398_v24 = vpop.f32.mrb[5].mxu0  ;;  %v1469_v47 = vsub.f32 %v1130_v17, %v1224_v23 }
  0xef   : > { %v1463_v45 = vsub.f32 %v1130_v17, %v398_v24 }
  0xf1   : > { %v1227_v25 = vpop.f32.mrb[6].mxu0 }
  0xf2   : > { %v471_v26 = vsub.f32 %v1130_v17, %v1227_v25  ;;  %v408_v27 = vpop.f32.mrb[7].mxu0 }
  0xf3   : > { %v1449_v29 = vsub.f32 %v1130_v17, %v408_v27 }
  0xf4   : > { %494 = vmin.xlane.f32.xlu0 %v471_v26 }
  0xf5   : > { %v1230_v28 = vpop.f32.mrb[8].mxu0 }
  0xf6   : > { %v473_v30 = vsub.f32 %v1130_v17, %v1230_v28  ;;  %v418_v31 = vpop.f32.mrb[9].mxu0 }
  0xf7   : > { %v1452_v32 = vsub.f32 %v1130_v17, %v418_v31 }
  0xf8   : > { %492 = vmin.xlane.f32.xlu0 %v1449_v29  ;;  %498 = vmin.xlane.f32.xlu1 %v473_v30 }
  0xf9   : > { %v1233_v33 = vpop.f32.mrb[10].mxu0 }
  0xfa   : > { %v428_v35 = vpop.f32.mrb[11].mxu0  ;;  %v475_v36 = vsub.f32 %v1130_v17, %v1233_v33 }
  0xfb   : > { %v474_v40 = vsub.f32 %v1130_v17, %v428_v35 }
  0xfc   : > { %482 = vmin.xlane.f32.xlu0 %v465_v34  ;;  %496 = vmin.xlane.f32.xlu1 %v1452_v32 }
  0xfd   : > { %v1236_v37 = vpop.f32.mrb[12].mxu0 }
  0xfe   : > { %v438_v39 = vpop.f32.mrb[13].mxu0  ;;  %v1461_v44 = vsub.f32 %v1130_v17, %v1236_v37 }
  0xff   : > { %v1467_v46 = vsub.f32 %v1130_v17, %v438_v39 }
 0x100   : > { %484 = vmin.xlane.f32.xlu0 %v1455_v38  ;;  %502 = vmin.xlane.f32.xlu1 %v475_v36 }
 0x101   : > { %v1239_v41 = vpop.f32.mrb[14].mxu0 }
 0x102   : > { %v448_v43 = vpop.f32.mrb[15].mxu0  ;;  %v1475_v49 = vsub.f32 %v1130_v17, %v1239_v41 }
 0x103   : > { %v1473_v48 = vsub.f32 %v1130_v17, %v448_v43 }
 0x104   : > { %486 = vmin.xlane.f32.xlu0 %v1458_v42  ;;  %500 = vmin.xlane.f32.xlu1 %v474_v40 }
 0x108   : > { %488 = vmin.xlane.f32.xlu0 %v1463_v45  ;;  %506 = vmin.xlane.f32.xlu1 %v1461_v44 }
 0x10c   : > { %490 = vmin.xlane.f32.xlu0 %v1469_v47  ;;  %504 = vmin.xlane.f32.xlu1 %v1467_v46 }
 0x110   : > { %508 = vmin.xlane.f32.xlu1 %v1473_v48 }
 0x114   : > { %510 = vmin.xlane.f32.xlu1 %v1475_v49 }
 0x176   : > { %v481_v51 = vpop.xlane.xlu0 %480 }
 0x177   : > { %vm514_vm4 = vcmp.le.f32.partialorder %v1446_v20, %v481_v51 }
 0x178   : > { %v1496_v0 = vsel %vm514_vm4, %v1479_v52, 128 }
 0x179   : > { %v547_v6 = vshra.s32 %v1496_v0, 16 }
 0x17b   : > { %v1516_v12 = vcvt.s32.f32 %v547_v6  ;;  %v825_v6 = vld [vmem:[%s1869_s2 + $0x38] sm:$0xff] }
 0x181   : > { %v495_v53 = vpop.xlane.xlu0 %494 }
 0x182   : > { %vm521_vm2 = vcmp.le.f32.partialorder %v471_v26, %v495_v53  ;;  %v818_v53 = vld [vmem:[%s1869_s2] sm:$0xff] }
 0x183   : > { %v1482_v54 = vsel %vm521_vm2, %v1479_v52, 128 }
 0x184   : > { %v645_v55 = vshra.s32 %v1482_v54, 16 }
 0x185   : > { %v493_v56 = vpop.xlane.xlu0 %492  ;;  %v499_v57 = vpop.xlane.xlu1 %498 }
 0x186   : > { %vm523_vm3 = vcmp.le.f32.partialorder %v473_v30, %v499_v57  ;;  %v1485_v58 = vcvt.s32.f32 %v645_v55  ;;  %vm520_vm6 = vcmp.le.f32.partialorder %v1449_v29, %v493_v56  ;;  %v819_v55 = vld [vmem:[%s1869_s2 + $0x8] sm:$0xff]  ;;  %v820_v56 = vld [vmem:[%s1869_s2 + $0x10] sm:$0xff] }
 0x187   : > { %v1488_v59 = vsel %vm523_vm3, %v1479_v52, 128  ;;  %v1508_v7 = vsel %vm520_vm6, %v1479_v52, 128  ;;  %v1296_v57 = vpack.c.bf16 %v819_v55, %v818_v53 }
 0x188   : > { %648 = vmin.xlane.f32.xlu1 %v1485_v58  ;;  %v673_v60 = vshra.s32 %v1488_v59, 16  ;;  %v631_v14 = vshra.s32 %v1508_v7, 16 }
 0x189   : > { %v483_v61 = vpop.xlane.xlu0 %482  ;;  %v497_v62 = vpop.xlane.xlu1 %496  ;;  %1297 = vmatprep.subr.bf16.mxu0 %v1296_v57  ;;  %1328 = vmatprep.subr.bf16.mxu1 %v1296_v57 }
 0x18a   : > { %vm515_vm5 = vcmp.le.f32.partialorder %v465_v34, %v483_v61  ;;  %v1493_v63 = vcvt.s32.f32 %v673_v60  ;;  %vm522_vm8 = vcmp.le.f32.partialorder %v1452_v32, %v497_v62  ;;  %v1532_v19 = vcvt.s32.f32 %v631_v14  ;;  %v821_v60 = vld [vmem:[%s1869_s2 + $0x18] sm:$0xff]  ;;  %v822_v62 = vld [vmem:[%s1869_s2 + $0x20] sm:$0xff]  ;;  %1299 = vmatpush3.bf16.msra.mxu0 %v1296_v57  ;;  %1336 = vmatpush3.bf16.msra.mxu1 %v1296_v57 }
 0x18b   : > { %v1499_v1 = vsel %vm515_vm5, %v1479_v52, 128  ;;  %v1522_v15 = vsel %vm522_vm8, %v1479_v52, 128  ;;  %v1300_v61 = vpack.c.bf16 %v821_v60, %v820_v56 }
 0x18c   : > { %676 = vmin.xlane.f32.xlu1 %v1493_v63  ;;  %v561_v2 = vshra.s32 %v1499_v1, 16  ;;  %v659_v21 = vshra.s32 %v1522_v15, 16 }
 0x18d   : > { %v485_v3 = vpop.xlane.xlu0 %484  ;;  %v503_v4 = vpop.xlane.xlu1 %502  ;;  %1301 = vmatprep.subr.bf16.mxu0 %v1300_v61  ;;  %1329 = vmatprep.subr.bf16.mxu1 %v1300_v61 }
 0x18e   : > { %vm525_vm7 = vcmp.le.f32.partialorder %v475_v36, %v503_v4  ;;  %v1504_v5 = vcvt.s32.f32 %v561_v2  ;;  %vm516_vm10 = vcmp.le.f32.partialorder %v1455_v38, %v485_v3  ;;  %v1548_v27 = vcvt.s32.f32 %v659_v21  ;;  %v823_v2 = vld [vmem:[%s1869_s2 + $0x28] sm:$0xff]  ;;  %v824_v4 = vld [vmem:[%s1869_s2 + $0x30] sm:$0xff]  ;;  %1303 = vmatpush3.bf16.msra.mxu0 %v1300_v61  ;;  %1337 = vmatpush3.bf16.msra.mxu1 %v1300_v61 }
 0x18f   : > { %v1511_v8 = vsel %vm525_vm7, %v1479_v52, 128  ;;  %v1538_v22 = vsel %vm516_vm10, %v1479_v52, 128  ;;  %v1304_v3 = vpack.c.bf16 %v823_v2, %v822_v62  ;;  %v560_v21 = vand.u32 65535, %v1499_v1 }
 0x190   : > { %564 = vmin.xlane.f32.xlu0 %v1504_v5  ;;  %v701_v9 = vshra.s32 %v1511_v8, 16  ;;  %v575_v29 = vshra.s32 %v1538_v22, 16  ;;  %v630_v1 = vand.u32 65535, %v1508_v7  ;;  %v658_v7 = vand.u32 65535, %v1522_v15 }
 0x191   : > { %v487_v10 = vpop.xlane.xlu0 %486  ;;  %v501_v11 = vpop.xlane.xlu1 %500  ;;  %1305 = vmatprep.subr.bf16.mxu0 %v1304_v3  ;;  %1330 = vmatprep.subr.bf16.mxu1 %v1304_v3  ;;  %v574_v53 = vand.u32 65535, %v1538_v22  ;;  %v828_v22 = vld [vmem:[%s1869_s2 + $0x50] sm:$0xff] }
 0x192   : > { %vm524_vm9 = vcmp.le.f32.partialorder %v474_v40, %v501_v11  ;;  %v1518_v13 = vcvt.s32.f32 %v701_v9  ;;  %vm517_vm12 = vcmp.le.f32.partialorder %v1458_v42, %v487_v10  ;;  %v1564_v35 = vcvt.s32.f32 %v575_v29  ;;  %1307 = vmatpush3.bf16.msra.mxu0 %v1304_v3  ;;  %1338 = vmatpush3.bf16.msra.mxu1 %v1304_v3 }
 0x193   : > { %v1525_v16 = vsel %vm524_vm9, %v1479_v52, 128  ;;  %v1554_v30 = vsel %vm517_vm12, %v1479_v52, 128  ;;  %v1308_v9 = vpack.c.bf16 %v825_v6, %v824_v4  ;;  %v644_v10 = vand.u32 65535, %v1482_v54 }
 0x194   : > { %550 = vmin.xlane.f32.xlu0 %v1516_v12  ;;  %704 = vmin.xlane.f32.xlu1 %v1518_v13  ;;  %v687_v17 = vshra.s32 %v1525_v16, 16  ;;  %v589_v37 = vshra.s32 %v1554_v30, 16  ;;  %v672_v11 = vand.u32 65535, %v1488_v59  ;;  %v546_v54 = vand.u32 65535, %v1496_v0 }
 0x195   : > { %v507_v18 = vpop.xlane.xlu1 %506  ;;  %v489_v23 = vpop.xlane.xlu0 %488  ;;  %1309 = vmatprep.subr.bf16.mxu0 %v1308_v9  ;;  %1331 = vmatprep.subr.bf16.mxu1 %v1308_v9  ;;  %v700_v59 = vand.u32 65535, %v1511_v8  ;;  %v660_v56 = vcvt.s32.f32 %v658_v7  ;;  %v576_v4 = vcvt.s32.f32 %v574_v53 }
 0x196   : > { %vm527_vm11 = vcmp.le.f32.partialorder %v1461_v44, %v507_v18  ;;  %v1534_v20 = vcvt.s32.f32 %v687_v17  ;;  %vm518_vm14 = vcmp.le.f32.partialorder %v1463_v45, %v489_v23  ;;  %v1580_v42 = vcvt.s32.f32 %v589_v37  ;;  %1311 = vmatpush3.bf16.msra.mxu0 %v1308_v9  ;;  %1339 = vmatpush3.bf16.msra.mxu1 %v1308_v9 }
 0x197   : > { %v1541_v24 = vsel %vm527_vm11, %v1479_v52, 128  ;;  %v1570_v38 = vsel %vm518_vm14, %v1479_v52, 128  ;;  %v646_v17 = vcvt.s32.f32 %v644_v10  ;;  %v548_v37 = vcvt.s32.f32 %v546_v54 }
 0x198   : > { %634 = vmin.xlane.f32.xlu0 %v1532_v19  ;;  %690 = vmin.xlane.f32.xlu1 %v1534_v20  ;;  %v729_v25 = vshra.s32 %v1541_v24, 16  ;;  %v603_v44 = vshra.s32 %v1570_v38, 16  ;;  %v702_v0 = vcvt.s32.f32 %v700_v59 }
 0x199   : > { %v505_v26 = vpop.xlane.xlu1 %504  ;;  %v491_v33 = vpop.xlane.xlu0 %490 }
 0x19a   : > { %vm526_vm13 = vcmp.le.f32.partialorder %v1467_v46, %v505_v26  ;;  %v1550_v28 = vcvt.s32.f32 %v729_v25  ;;  %vm519_vm0 = vcmp.le.f32.partialorder %v1469_v47, %v491_v33  ;;  %v674_v25 = vcvt.s32.f32 %v672_v11 }
 0x19b   : > { %v1557_v31 = vsel %vm526_vm13, %v1479_v52, 128  ;;  %v1586_v45 = vsel %vm519_vm0, %v1479_v52, 128  ;;  %v686_v33 = vand.u32 65535, %v1525_v16  ;;  %v728_v16 = vand.u32 65535, %v1541_v24 }
 0x19c   : > { %662 = vmin.xlane.f32.xlu0 %v1548_v27  ;;  %732 = vmin.xlane.f32.xlu1 %v1550_v28  ;;  %v715_v32 = vshra.s32 %v1557_v31, 16  ;;  %v617_v50 = vshra.s32 %v1586_v45, 16 }
 0x19d   : > { %v509_v34 = vpop.xlane.xlu1 %508  ;;  %v730_v57 = vcvt.s32.f32 %v728_v16 }
 0x19e   : > { %vm528_vm15 = vcmp.le.f32.partialorder %v1473_v48, %v509_v34  ;;  %v1566_v36 = vcvt.s32.f32 %v715_v32  ;;  %v1594_v48 = vcvt.s32.f32 %v603_v44  ;;  %v1601_v51 = vcvt.s32.f32 %v617_v50 }
 0x19f   : > { %v1573_v39 = vsel %vm528_vm15, %v1479_v52, 128  ;;  %v562_v32 = vcvt.s32.f32 %v560_v21  ;;  %v632_v44 = vcvt.s32.f32 %v630_v1 }
 0x1a0   : > { %578 = vmin.xlane.f32.xlu0 %v1564_v35  ;;  %718 = vmin.xlane.f32.xlu1 %v1566_v36  ;;  %v743_v40 = vshra.s32 %v1573_v39, 16  ;;  %v742_v2 = vand.u32 65535, %v1573_v39  ;;  %v831_v39 = vld [vmem:[%s1869_s2 + $0x68] sm:$0xff] }
 0x1a1   : > { %v511_v41 = vpop.xlane.xlu1 %510 }
 0x1a2   : > { %vm529_vm2 = vcmp.le.f32.partialorder %v1475_v49, %v511_v41  ;;  %v1582_v43 = vcvt.s32.f32 %v743_v40 }
 0x1a3   : > { %v1589_v46 = vsel %vm529_vm2, %v1479_v52, 128 }
 0x1a4   : > { %592 = vmin.xlane.f32.xlu0 %v1580_v42  ;;  %746 = vmin.xlane.f32.xlu1 %v1582_v43  ;;  %v757_v47 = vshra.s32 %v1589_v46, 16 }
 0x1a6   : > { %v1596_v49 = vcvt.s32.f32 %v757_v47  ;;  %v688_v47 = vcvt.s32.f32 %v686_v33 }
 0x1a8   : > { %606 = vmin.xlane.f32.xlu0 %v1594_v48  ;;  %760 = vmin.xlane.f32.xlu1 %v1596_v49 }
 0x1ac   : > { %620 = vmin.xlane.f32.xlu0 %v1601_v51 }
 0x215   : > { %v1630_v14 = vpop.xlane.xlu1 %648 }
 0x216   : > { %vm650_vm3 = vcmp.eq.f32.partialorder %v1485_v58, %v1630_v14 }
 0x217   : > { %v651_v18 = vsel %vm650_vm3, %v646_v17, inf  ;;  %v756_v17 = vand.u32 65535, %v1589_v46  ;;  %v833_v46 = vld [vmem:[%s1869_s2 + $0x78] sm:$0xff] }
 0x218   : > { %652 = vmin.xlane.f32.xlu1 %v651_v18 }
 0x219   : > { %v1635_v23 = vpop.xlane.xlu1 %676  ;;  %v758_v1 = vcvt.s32.f32 %v756_v17 }
 0x21a   : > { %vm678_vm4 = vcmp.eq.f32.partialorder %v1493_v63, %v1635_v23 }
 0x21b   : > { %v679_v26 = vsel %vm678_vm4, %v674_v25, inf  ;;  %v744_v25 = vcvt.s32.f32 %v742_v2  ;;  %vm995_vm4 = vcmask 7168  }
 0x21c   : > { %680 = vmin.xlane.f32.xlu1 %v679_v26 }
 0x21d   : > { %v1641_v29 = vpop.xlane.xlu0 %564 }
 0x21e   : > { %vm566_vm5 = vcmp.eq.f32.partialorder %v1504_v5, %v1641_v29 }
 0x21f   : > { %v567_v58 = vsel %vm566_vm5, %v562_v32, inf }
 0x220   : > { %568 = vmin.xlane.f32.xlu0 %v567_v58 }
 0x221   : > { %v1647_v34 = vpop.xlane.xlu0 %550  ;;  %v1649_v63 = vpop.xlane.xlu1 %704 }
 0x222   : > { %vm552_vm6 = vcmp.eq.f32.partialorder %v1516_v12, %v1647_v34  ;;  %vm706_vm7 = vcmp.eq.f32.partialorder %v1518_v13, %v1649_v63  ;;  %v826_v12 = vld [vmem:[%s1869_s2 + $0x40] sm:$0xff]  ;;  %v827_v13 = vld [vmem:[%s1869_s2 + $0x48] sm:$0xff] }
 0x223   : > { %v553_v8 = vsel %vm552_vm6, %v548_v37, inf  ;;  %v707_v5 = vsel %vm706_vm7, %v702_v0, inf  ;;  %v1312_v50 = vpack.c.bf16 %v827_v13, %v826_v12  ;;  %v571_v12 = vcvt.f32.s32 %v1641_v29 }
 0x224   : > { %554 = vmin.xlane.f32.xlu0 %v553_v8  ;;  %708 = vmin.xlane.f32.xlu1 %v707_v5 }
 0x225   : > { %v1657_v40 = vpop.xlane.xlu0 %634  ;;  %v1659_v41 = vpop.xlane.xlu1 %690  ;;  %1313 = vmatprep.subr.bf16.mxu0 %v1312_v50  ;;  %1332 = vmatprep.subr.bf16.mxu1 %v1312_v50 }
 0x226   : > { %vm636_vm8 = vcmp.eq.f32.partialorder %v1532_v19, %v1657_v40  ;;  %vm692_vm9 = vcmp.eq.f32.partialorder %v1534_v20, %v1659_v41  ;;  %v714_v19 = vand.u32 65535, %v1557_v31  ;;  %1315 = vmatpush3.bf16.msra.mxu0 %v1312_v50  ;;  %v829_v31 = vld [vmem:[%s1869_s2 + $0x58] sm:$0xff]  ;;  %1340 = vmatpush3.bf16.msra.mxu1 %v1312_v50  ;;  %v711_v50 = vcvt.f32.s32 %v1649_v63 }
 0x227   : > { %v637_v15 = vsel %vm636_vm8, %v632_v44, inf  ;;  %v693_v24 = vsel %vm692_vm9, %v688_v47, inf  ;;  %v1316_v62 = vpack.c.bf16 %v829_v31, %v828_v22  ;;  %v697_v29 = vcvt.f32.s32 %v1659_v41 }
 0x228   : > { %638 = vmin.xlane.f32.xlu0 %v637_v15  ;;  %694 = vmin.xlane.f32.xlu1 %v693_v24  ;;  %v716_v6 = vcvt.s32.f32 %v714_v19  ;;  %v572_v15 = vshll.u32 %v571_v12, 16  ;;  %v557_v24 = vcvt.f32.s32 %v1647_v34 }
 0x229   : > { %v1673_v55 = vpop.xlane.xlu0 %662  ;;  %v1675_v20 = vpop.xlane.xlu1 %732  ;;  %1317 = vmatprep.subr.bf16.mxu0 %v1316_v62  ;;  %1333 = vmatprep.subr.bf16.mxu1 %v1316_v62  ;;  %v698_v2 = vshll.u32 %v697_v29, 16 }
 0x22a   : > { %vm664_vm10 = vcmp.eq.f32.partialorder %v1548_v27, %v1673_v55  ;;  %vm734_vm11 = vcmp.eq.f32.partialorder %v1550_v28, %v1675_v20  ;;  %v588_v27 = vand.u32 65535, %v1554_v30  ;;  %1319 = vmatpush3.bf16.msra.mxu0 %v1316_v62  ;;  %v830_v30 = vld [vmem:[%s1869_s2 + $0x60] sm:$0xff]  ;;  %1341 = vmatpush3.bf16.msra.mxu1 %v1316_v62  ;;  %v558_v31 = vshll.u32 %v557_v24, 16 }
 0x22b   : > { %v665_v60 = vsel %vm664_vm10, %v660_v56, inf  ;;  %v735_v61 = vsel %vm734_vm11, %v730_v57, inf  ;;  %v1320_v11 = vpack.c.bf16 %v831_v39, %v830_v30  ;;  %v641_v56 = vcvt.f32.s32 %v1657_v40 }
 0x22c   : > { %666 = vmin.xlane.f32.xlu0 %v665_v60  ;;  %736 = vmin.xlane.f32.xlu1 %v735_v61  ;;  %v590_v21 = vcvt.s32.f32 %v588_v27  ;;  %v712_v60 = vshll.u32 %v711_v50, 16  ;;  %v739_v41 = vcvt.f32.s32 %v1675_v20 }
 0x22d   : > { %v1689_v28 = vpop.xlane.xlu0 %578  ;;  %v1691_v3 = vpop.xlane.xlu1 %718  ;;  %1321 = vmatprep.subr.bf16.mxu0 %v1320_v11  ;;  %1334 = vmatprep.subr.bf16.mxu1 %v1320_v11  ;;  %v642_v27 = vshll.u32 %v641_v56, 16 }
 0x22e   : > { %vm580_vm12 = vcmp.eq.f32.partialorder %v1564_v35, %v1689_v28  ;;  %vm720_vm13 = vcmp.eq.f32.partialorder %v1566_v36, %v1691_v3  ;;  %v602_v35 = vand.u32 65535, %v1570_v38  ;;  %1323 = vmatpush3.bf16.msra.mxu0 %v1320_v11  ;;  %v832_v38 = vld [vmem:[%s1869_s2 + $0x70] sm:$0xff]  ;;  %1342 = vmatpush3.bf16.msra.mxu1 %v1320_v11  ;;  %v585_v11 = vcvt.f32.s32 %v1689_v28 }
 0x22f   : > { %v581_v9 = vsel %vm580_vm12, %v576_v4, inf  ;;  %v721_v10 = vsel %vm720_vm13, %v716_v6, inf  ;;  %v1324_v59 = vpack.c.bf16 %v833_v46, %v832_v38  ;;  %v669_v4 = vcvt.f32.s32 %v1673_v55 }
 0x230   : > { %582 = vmin.xlane.f32.xlu0 %v581_v9  ;;  %722 = vmin.xlane.f32.xlu1 %v721_v10  ;;  %v604_v58 = vcvt.s32.f32 %v602_v35  ;;  %v1361_v9 = vmov 1.0   ;;  %v725_v35 = vcvt.f32.s32 %v1691_v3  ;;  %v586_v3 = vshll.u32 %v585_v11, 16 }
 0x231   : > { %v1705_v36 = vpop.xlane.xlu0 %592  ;;  %v1707_v18 = vpop.xlane.xlu1 %746  ;;  %1325 = vmatprep.subr.bf16.mxu0 %v1324_v59  ;;  %1335 = vmatprep.subr.bf16.mxu1 %v1324_v59  ;;  %v670_v10 = vshll.u32 %v669_v4, 16 }
 0x232   : > { %vm594_vm14 = vcmp.eq.f32.partialorder %v1580_v42, %v1705_v36  ;;  %vm748_vm15 = vcmp.eq.f32.partialorder %v1582_v43, %v1707_v18  ;;  %v616_v42 = vand.u32 65535, %v1586_v45  ;;  %1327 = vmatpush3.bf16.msra.mxu0 %v1324_v59  ;;  %1343 = vmatpush3.bf16.msra.mxu1 %v1324_v59  ;;  %v599_v59 = vcvt.f32.s32 %v1705_v36 }
 0x233   : > { %v595_v26 = vsel %vm594_vm14, %v590_v21, inf  ;;  %v749_v54 = vsel %vm748_vm15, %v744_v25, inf  ;;  %v740_v25 = vshll.u32 %v739_v41, 16 }
 0x234   : > { %596 = vmin.xlane.f32.xlu0 %v595_v26  ;;  %750 = vmin.xlane.f32.xlu1 %v749_v54  ;;  %v618_v0 = vcvt.s32.f32 %v616_v42  ;;  %v726_v54 = vshll.u32 %v725_v35, 16 }
 0x235   : > { %v1720_v32 = vpop.xlane.xlu0 %606  ;;  %v1722_v43 = vpop.xlane.xlu1 %760 }
 0x236   : > { %vm608_vm0 = vcmp.eq.f32.partialorder %v1594_v48, %v1720_v32  ;;  %vm762_vm2 = vcmp.eq.f32.partialorder %v1596_v49, %v1722_v43  ;;  %v655_v48 = vcvt.f32.s32 %v1630_v14  ;;  %v683_v49 = vcvt.f32.s32 %v1635_v23 }
 0x237   : > { %v609_v33 = vsel %vm608_vm0, %v604_v58, inf  ;;  %v763_v37 = vsel %vm762_vm2, %v758_v1, inf  ;;  %v753_v1 = vcvt.f32.s32 %v1707_v18  ;;  %v600_v18 = vshll.u32 %v599_v59, 16 }
 0x238   : > { %610 = vmin.xlane.f32.xlu0 %v609_v33  ;;  %764 = vmin.xlane.f32.xlu1 %v763_v37  ;;  %v656_v7 = vshll.u32 %v655_v48, 16  ;;  %v767_v48 = vcvt.f32.s32 %v1722_v43 }
 0x239   : > { %v1728_v45 = vpop.xlane.xlu0 %620 }
 0x23a   : > { %vm622_vm3 = vcmp.eq.f32.partialorder %v1601_v51, %v1728_v45  ;;  %v684_v51 = vshll.u32 %v683_v49, 16  ;;  %v754_v49 = vshll.u32 %v753_v1, 16 }
 0x23b   : > { %v623_v8 = vsel %vm622_vm3, %v618_v0, inf }
 0x23c   : > { %624 = vmin.xlane.f32.xlu0 %v623_v8  ;;  %v613_v8 = vcvt.f32.s32 %v1720_v32 }
 0x2a5   : > { %v653_v5 = vpop.xlane.xlu1 %652 }
 0x2a6   : > { %v654_v16 = vcvt.f32.s32 %v653_v5 }
 0x2a8   : > { %v657_v44 = vadd.s32 %v656_v7, %v654_v16 }
 0x2a9   : > { %v681_v47 = vpop.xlane.xlu1 %680 }
 0x2aa   : > { %1003 = vst.msk [vmem:[%s1738_s15 + $0x38] sm:$0xff] %vm995_vm4, %v657_v44  ;;  %v682_v14 = vcvt.f32.s32 %v681_v47  ;;  %vm777_vm8 = vcmp.eq.s32.totalorder %v1479_v52, %v657_v44  ;;  %v614_v47 = vshll.u32 %v613_v8, 16 }
 0x2ac   : > { %v1743_v13 = vadd.s32 %v684_v51, %v682_v14  ;;  %v768_v51 = vshll.u32 %v767_v48, 16 }
 0x2ad   : > { %v569_v23 = vpop.xlane.xlu0 %568 }
 0x2ae   : > { %1005 = vst.msk [vmem:[%s1738_s15 + $0x48] sm:$0xff] %vm995_vm4, %v1743_v13  ;;  %v570_v53 = vcvt.f32.s32 %v569_v23  ;;  %vm779_vm10 = vcmp.eq.s32.totalorder %v1479_v52, %v1743_v13  ;;  %v627_v13 = vcvt.f32.s32 %v1728_v45 }
 0x2b0   : > { %v573_v19 = vadd.s32 %v572_v15, %v570_v53  ;;  %v628_v53 = vshll.u32 %v627_v13, 16 }
 0x2b1   : > { %v555_v57 = vpop.xlane.xlu0 %554  ;;  %v709_v22 = vpop.xlane.xlu1 %708 }
 0x2b2   : > { %997 = vst.msk [vmem:[%s1738_s15 + $0x8] sm:$0xff] %vm995_vm4, %v573_v19  ;;  %v556_v34 = vcvt.f32.s32 %v555_v57  ;;  %v710_v61 = vcvt.f32.s32 %v709_v22  ;;  %vm771_vm6 = vcmp.eq.s32.totalorder %v1479_v52, %v573_v19 }
 0x2b4   : > { %v559_v63 = vadd.s32 %v558_v31, %v556_v34  ;;  %v1754_v62 = vadd.s32 %v712_v60, %v710_v61 }
 0x2b5   : > { %v639_v40 = vpop.xlane.xlu0 %638  ;;  %v695_v6 = vpop.xlane.xlu1 %694 }
 0x2b6   : > { %996 = vst.msk [vmem:[%s1738_s15] sm:$0xff] %vm995_vm4, %v559_v63  ;;  %1007 = vst.msk [vmem:[%s1738_s15 + $0x58] sm:$0xff] %vm995_vm4, %v1754_v62  ;;  %v640_v30 = vcvt.f32.s32 %v639_v40  ;;  %v696_v39 = vcvt.f32.s32 %v695_v6  ;;  %vm770_vm5 = vcmp.eq.s32.totalorder %v1479_v52, %v559_v63  ;;  %vm781_vm13 = vcmp.eq.s32.totalorder %v1479_v52, %v1754_v62 }
 0x2b7   : > { %1272 = vmatprep.mubr.msk.f32.mxu0 %vm770_vm5, %v1361_v9 }
 0x2b8   : > { %v699_v55 = vadd.s32 %v698_v2, %v696_v39  ;;  %1273 = vmatmul.mubr.msk.f32.vlgmr.msra.gmra.mrb[16].mxu0 %vm771_vm6, %v1361_v9  ;;  %v643_v20 = vadd.s32 %v642_v27, %v640_v30 }
 0x2b9   : > { %v667_v17 = vpop.xlane.xlu0 %666  ;;  %v737_v21 = vpop.xlane.xlu1 %736 }
 0x2ba   : > { %1006 = vst.msk [vmem:[%s1738_s15 + $0x50] sm:$0xff] %vm995_vm4, %v699_v55  ;;  %v668_v38 = vcvt.f32.s32 %v667_v17  ;;  %v738_v46 = vcvt.f32.s32 %v737_v21  ;;  %vm776_vm7 = vcmp.eq.s32.totalorder %v1479_v52, %v643_v20  ;;  %1002 = vst.msk [vmem:[%s1738_s15 + $0x30] sm:$0xff] %vm995_vm4, %v643_v20  ;;  %vm780_vm11 = vcmp.eq.s32.totalorder %v1479_v52, %v699_v55 }
 0x2bb   : > { %1281 = vmatprep.mubr.msk.f32.mxu1 %vm776_vm7, %v1361_v9 }
 0x2bc   : > { %v671_v28 = vadd.s32 %v670_v10, %v668_v38  ;;  %v741_v26 = vadd.s32 %v740_v25, %v738_v46  ;;  %1282 = vmatmul.mubr.msk.f32.vlgmr.msra.gmra.mrb[0].mxu1 %vm777_vm8, %v1361_v9 }
 0x2bd   : > { %v583_v42 = vpop.xlane.xlu0 %582  ;;  %v723_v58 = vpop.xlane.xlu1 %722 }
 0x2be   : > { %1004 = vst.msk [vmem:[%s1738_s15 + $0x40] sm:$0xff] %vm995_vm4, %v671_v28  ;;  %1009 = vst.msk [vmem:[%s1738_s15 + $0x68] sm:$0xff] %vm995_vm4, %v741_v26  ;;  %v584_v33 = vcvt.f32.s32 %v583_v42  ;;  %v724_v37 = vcvt.f32.s32 %v723_v58  ;;  %vm778_vm9 = vcmp.eq.s32.totalorder %v1479_v52, %v671_v28  ;;  %vm783_vm0 = vcmp.eq.s32.totalorder %v1479_v52, %v741_v26 }
 0x2bf   : > { %1284 = vmatprep.mubr.msk.f32.mxu1 %vm778_vm9, %v1361_v9 }
 0x2c0   : > { %v587_v36 = vadd.s32 %v586_v3, %v584_v33  ;;  %v727_v0 = vadd.s32 %v726_v54, %v724_v37  ;;  %1285 = vmatmul.mubr.msk.f32.gmra.mrb[2].mxu1 %vm779_vm10, %v1361_v9 }
 0x2c1   : > { %v597_v5 = vpop.xlane.xlu0 %596  ;;  %1287 = vmatprep.mubr.msk.f32.mxu1 %vm780_vm11, %v1361_v9  ;;  %v751_v7 = vpop.xlane.xlu1 %750 }
 0x2c2   : > { %998 = vst.msk [vmem:[%s1738_s15 + $0x10] sm:$0xff] %vm995_vm4, %v587_v36  ;;  %1008 = vst.msk [vmem:[%s1738_s15 + $0x60] sm:$0xff] %vm995_vm4, %v727_v0  ;;  %v598_v16 = vcvt.f32.s32 %v597_v5  ;;  %v752_v44 = vcvt.f32.s32 %v751_v7  ;;  %vm772_vm12 = vcmp.eq.s32.totalorder %v1479_v52, %v587_v36  ;;  %vm782_vm14 = vcmp.eq.s32.totalorder %v1479_v52, %v727_v0 }
 0x2c3   : > { %1275 = vmatprep.mubr.msk.f32.mxu0 %vm772_vm12, %v1361_v9 }
 0x2c4   : > { %v601_v32 = vadd.s32 %v600_v18, %v598_v16  ;;  %v755_v43 = vadd.s32 %v754_v49, %v752_v44  ;;  %1288 = vmatmul.mubr.msk.f32.gmra.mrb[4].mxu1 %vm781_vm13, %v1361_v9 }
 0x2c5   : > { %v611_v12 = vpop.xlane.xlu0 %610  ;;  %1290 = vmatprep.mubr.msk.f32.mxu1 %vm782_vm14, %v1361_v9  ;;  %v765_v14 = vpop.xlane.xlu1 %764 }
 0x2c6   : > { %999 = vst.msk [vmem:[%s1738_s15 + $0x18] sm:$0xff] %vm995_vm4, %v601_v32  ;;  %1010 = vst.msk [vmem:[%s1738_s15 + $0x70] sm:$0xff] %vm995_vm4, %v755_v43  ;;  %v612_v23 = vcvt.f32.s32 %v611_v12  ;;  %v766_v15 = vcvt.f32.s32 %v765_v14  ;;  %vm773_vm15 = vcmp.eq.s32.totalorder %v1479_v52, %v601_v32  ;;  %vm784_vm2 = vcmp.eq.s32.totalorder %v1479_v52, %v755_v43 }
 0x2c7   : > { %1276 = vmatmul.mubr.msk.f32.gmra.mrb[18].mxu0 %vm773_vm15, %v1361_v9 }
 0x2c8   : > { %v615_v24 = vadd.s32 %v614_v47, %v612_v23  ;;  %v769_v50 = vadd.s32 %v768_v51, %v766_v15  ;;  %1291 = vmatmul.mubr.msk.f32.gmra.mrb[6].mxu1 %vm783_vm0, %v1361_v9 }
 0x2c9   : > { %v625_v45 = vpop.xlane.xlu0 %624  ;;  %1293 = vmatprep.mubr.msk.f32.mxu1 %vm784_vm2, %v1361_v9 }
 0x2ca   : > { %1000 = vst.msk [vmem:[%s1738_s15 + $0x20] sm:$0xff] %vm995_vm4, %v615_v24  ;;  %1011 = vst.msk [vmem:[%s1738_s15 + $0x78] sm:$0xff] %vm995_vm4, %v769_v50  ;;  %v626_v19 = vcvt.f32.s32 %v625_v45  ;;  %vm774_vm3 = vcmp.eq.s32.totalorder %v1479_v52, %v615_v24  ;;  %vm785_vm5 = vcmp.eq.s32.totalorder %v1479_v52, %v769_v50 }
 0x2cb   : > { %1278 = vmatprep.mubr.msk.f32.mxu0 %vm774_vm3, %v1361_v9 }
 0x2cc   : > { %v629_v56 = vadd.s32 %v628_v53, %v626_v19  ;;  %1294 = vmatmul.mubr.msk.f32.gmra.mrb[8].mxu1 %vm785_vm5, %v1361_v9 }
 0x2ce   : > { %1001 = vst.msk [vmem:[%s1738_s15 + $0x28] sm:$0xff] %vm995_vm4, %v629_v56  ;;  %vm775_vm6 = vcmp.eq.s32.totalorder %v1479_v52, %v629_v56 }
 0x2cf   : > { %1279 = vmatmul.mubr.msk.f32.gmra.mrb[20].mxu0 %vm775_vm6, %v1361_v9 }
 0x38b   : > { %v1274_v29 = vpop.f32.mrb[16].mxu0 }
 0x38c   : > { %980 = vst.msk [vmem:[%s1830_s19 + $0x8] sm:$0xff] %vm259_vm1, %v1274_v29  ;;  %v900_v52 = vpop.f32.mrb[17].mxu0 }
 0x38d   : > { %979 = vst.msk [vmem:[%s1830_s19] sm:$0xff] %vm259_vm1, %v900_v52 }
 0x38f   : > { %v1283_v57 = vpop.f32.mrb[0].mxu1 }
 0x390   : > { %986 = vst.msk [vmem:[%s1830_s19 + $0x38] sm:$0xff] %vm259_vm1, %v1283_v57  ;;  %v930_v22 = vpop.f32.mrb[1].mxu1 }
 0x391   : > { %985 = vst.msk [vmem:[%s1830_s19 + $0x30] sm:$0xff] %vm259_vm1, %v930_v22 }
 0x393   : > { %v1286_v31 = vpop.f32.mrb[2].mxu1 }
 0x394   : > { %988 = vst.msk [vmem:[%s1830_s19 + $0x48] sm:$0xff] %vm259_vm1, %v1286_v31  ;;  %v940_v60 = vpop.f32.mrb[3].mxu1 }
 0x395   : > { %987 = vst.msk [vmem:[%s1830_s19 + $0x40] sm:$0xff] %vm259_vm1, %v940_v60 }
 0x397   : > { %v1289_v34 = vpop.f32.mrb[4].mxu1 }
 0x398   : > { %990 = vst.msk [vmem:[%s1830_s19 + $0x58] sm:$0xff] %vm259_vm1, %v1289_v34  ;;  %v950_v61 = vpop.f32.mrb[5].mxu1 }
 0x399   : > { %989 = vst.msk [vmem:[%s1830_s19 + $0x50] sm:$0xff] %vm259_vm1, %v950_v61 }
 0x39a   : > { %v1277_v63 = vpop.f32.mrb[18].mxu0 }
 0x39b   : > { %982 = vst.msk [vmem:[%s1830_s19 + $0x18] sm:$0xff] %vm259_vm1, %v1277_v63  ;;  %v910_v62 = vpop.f32.mrb[19].mxu0  ;;  %v1292_v27 = vpop.f32.mrb[6].mxu1 }
 0x39c   : > { %981 = vst.msk [vmem:[%s1830_s19 + $0x10] sm:$0xff] %vm259_vm1, %v910_v62  ;;  %992 = vst.msk [vmem:[%s1830_s19 + $0x68] sm:$0xff] %vm259_vm1, %v1292_v27  ;;  %v960_v2 = vpop.f32.mrb[7].mxu1 }
 0x39d   : > { %991 = vst.msk [vmem:[%s1830_s19 + $0x60] sm:$0xff] %vm259_vm1, %v960_v2 }
 0x39f   : > { %v1295_v4 = vpop.f32.mrb[8].mxu1 }
 0x3a0   : > { %994 = vst.msk [vmem:[%s1830_s19 + $0x78] sm:$0xff] %vm259_vm1, %v1295_v4  ;;  %v970_v40 = vpop.f32.mrb[9].mxu1 }
 0x3a1   : > { %993 = vst.msk [vmem:[%s1830_s19 + $0x70] sm:$0xff] %vm259_vm1, %v970_v40 }
 0x3a2   : > { %v1280_v6 = vpop.f32.mrb[20].mxu0 }
 0x3a3   : > { %984 = vst.msk [vmem:[%s1830_s19 + $0x28] sm:$0xff] %vm259_vm1, %v1280_v6  ;;  %v920_v41 = vpop.f32.mrb[21].mxu0 }
 0x3a4   : > { %983 = vst.msk [vmem:[%s1830_s19 + $0x20] sm:$0xff] %vm259_vm1, %v920_v41 }
 0x3a5 PF: > { %s16_s18 = sadd.s32 1, %s1359_s18  }
 0x3a6   : > { %p13_p4 = scmp.ge.s32.totalorder %s16_s18, 6  }
 0x3a8   :  { %15 = sbr.rel (!%p13_p4) target bundleno = 1 (0x1), region = 78 }

</bundles_post_ra>
